<compile_context>
chip_gen: v7x
topology: tpu7x:2x2x1
jax: 0.10.0
libtpu: 0.0.40
codegen_flags: <defaults>
</compile_context>

<pallas_src>
import functools

import jax
import jax.numpy as jnp
from jax.experimental import pallas as pl
from jax.experimental.pallas import tpu as pltpu

EPS = 1e-5  # PyTorch GroupNorm default eps


# --------------------------------------------------------------------------- #
# Hardware / block-size helpers
# --------------------------------------------------------------------------- #
def _vmem_capacity_bytes():
    """Physical per-core VMEM; falls back to the v7x-conservative 64 MiB."""
    try:
        cap = getattr(pltpu.get_tpu_info(), "vmem_capacity_bytes", None)
        if cap:
            return int(cap)
    except Exception:
        pass
    return 64 * 1024 * 1024


def _pick_block(S, per_col_bytes, budget_bytes, bs_cap=32768):
    """Largest divisor of S that is a multiple of 128 and fits the VMEM budget."""
    if S <= 1024 or S % 128 != 0:
        # TODO(synk): pad/mask the spatial tail instead of the whole-sample
        # fallback when S is not a multiple of 128.
        return S
    max_bs = min(bs_cap, max(128, budget_bytes // max(per_col_bytes, 1)))
    max_bs = (max_bs // 128) * 128
    bs = 128
    for cand in range(128, min(S, max_bs) + 1, 128):
        if S % cand == 0:
            bs = cand
    return bs


# --------------------------------------------------------------------------- #
# Pass 1: per-tile means + per-chunk centered Gram matrices (MXU).
# --------------------------------------------------------------------------- #
def _make_stats_kernel(bs):
    inv_n = 1.0 / float(bs)

    def kernel(g_ref, x_ref, mg_ref, mx_ref, gg_ref, gx_ref):
        s = pl.program_id(2)

        def tile(t, m_ref, acc_ref):
            tf = t.astype(jnp.float32)                         # (K, BS)
            m = jnp.sum(tf, axis=1, keepdims=True) * inv_n     # (K, 1)
            c = tf - m                                         # per-tile centering
            gram = jax.lax.dot_general(                        # (K, K) on the MXU
                c, c, (((1,), (1,)), ((), ())),
                preferred_element_type=jnp.float32)
            m_ref[0, 0] = m                                    # per-tile mean slot

            @pl.when(s == 0)
            def _():
                acc_ref[0, 0] = gram

            @pl.when(s > 0)
            def _():
                acc_ref[0, 0] += gram

        tile(g_ref[0], mg_ref, gg_ref)
        tile(x_ref[0], mx_ref, gx_ref)

    return kernel


# --------------------------------------------------------------------------- #
# Pass 2: h = PReLU(W'g@g + W'x@x + shift)  (GN16 folded into the weights),
#         p = wpsi.h + bpsi, per-tile stats of p.  No cross-tile accumulators.
# --------------------------------------------------------------------------- #
def _make_mid_kernel(bs):
    inv_n = 1.0 / float(bs)

    def kernel(g_ref, x_ref, wgp_ref, wxp_ref, sh_ref, wpsi_ref, ab_ref,
               p_ref, pm_ref, pm2_ref):
        h = (jnp.dot(wgp_ref[0], g_ref[0], preferred_element_type=jnp.float32)
             + jnp.dot(wxp_ref[0], x_ref[0], preferred_element_type=jnp.float32)
             + sh_ref[0])                                      # (F_int, BS)
        alpha = ab_ref[0:1, 0:1]                               # shared PReLU weight
        bpsi = ab_ref[0:1, 1:2]
        h = jnp.where(h >= 0.0, h, alpha * h)

        # psi 1x1x1 conv: (1, F_int) @ (F_int, BS)
        p = jnp.dot(wpsi_ref[...], h, preferred_element_type=jnp.float32) + bpsi
        p_ref[0] = p.astype(p_ref.dtype)                       # (1, BS) lane-dense

        m = jnp.sum(p, axis=1, keepdims=True) * inv_n          # f32 per-tile stats
        d = p - m
        pm_ref[0, 0] = m
        pm2_ref[0, 0] = jnp.sum(d * d, axis=1, keepdims=True)

    return kernel


# --------------------------------------------------------------------------- #
# Pass 3: psi = sigmoid(scale * p_raw + shift), out = x * psi.
# --------------------------------------------------------------------------- #
def _apply_kernel(x_ref, p_ref, ps_ref, o_ref):
    psc = ps_ref[0, 0:1, 0:1]                                  # (1, 1)
    psh = ps_ref[0, 0:1, 1:2]
    psi = jax.nn.sigmoid(p_ref[0].astype(jnp.float32) * psc + psh)   # (1, BS)
    # bf16 x: multiply in bf16 (native VALU on v6e/v7x); f32 x stays f32.
    o_ref[0] = (x_ref[0] * psi.astype(x_ref.dtype)).astype(o_ref.dtype)


# --------------------------------------------------------------------------- #
# Wrapper
# --------------------------------------------------------------------------- #
def attention_block_pallas(g, x, params, num_groups=16, max_block=32768):
    # g: (N, F_l, D, H, W), x: (N, F_g, D, H, W)
    N, F_l = g.shape[0], g.shape[1]
    F_g = x.shape[1]
    S = 1
    for d in g.shape[2:]:
        S *= int(d)
    F_int = params["wg"].shape[1]
    cpg = F_int // num_groups
    Sf = float(S)

    # NCDHW -> (N, C, S): free reshape, channels on sublanes, spatial on lanes.
    g3 = g.reshape(N, F_l, S)
    x3 = x.reshape(N, F_g, S)

    in_dt = jnp.result_type(g.dtype, x.dtype)
    low_prec = in_dt == jnp.bfloat16
    # bf16 inputs: keep the MXU operands and the (N,1,S) intermediate in bf16
    # (halves that round-trip); f32 inputs stay exact end-to-end.
    p_dtype = jnp.bfloat16 if low_prec else jnp.float32
    mm_dtype = jnp.bfloat16 if low_prec else jnp.float32

    # Generation-aware VMEM budgets (v5e/v6e: 128 MiB; v7x: 64 MiB).
    MiB = 1024 * 1024
    if _vmem_capacity_bytes() >= 96 * MiB:
        vmem_limit, budget_12, budget_3 = 64 * MiB, 32 * MiB, 40 * MiB
    else:
        vmem_limit, budget_12, budget_3 = 48 * MiB, 20 * MiB, 24 * MiB

    in_item = max(jnp.dtype(g3.dtype).itemsize, jnp.dtype(x3.dtype).itemsize)
    out_item = jnp.dtype(x.dtype).itemsize
    p_item = jnp.dtype(p_dtype).itemsize

    # passes 1/2 share a block: double-buffered g/x tiles + f32 centered copies
    # (pass 1) / (F_int, BS) h temporary (pass 2) + double-buffered p tile.
    per_col_12 = (4 * (F_l + F_g) * in_item
                  + 4 * (F_l + F_g)
                  + 4 * F_int
                  + 2 * p_item + 16)
    BS12 = _pick_block(S, per_col_12, budget_12, bs_cap=max_block)
    n_s = S // BS12

    # pass 3 has a much smaller per-column footprint -> its own (bigger) block.
    per_col_3 = 2 * F_g * in_item + 2 * F_g * out_item + 2 * p_item + 8
    BS3 = _pick_block(S, per_col_3, budget_3, bs_cap=max_block)
    n_s3 = S // BS3

    # Chunk the pass-1 reduction so its Gram accumulators are per (n, chunk):
    # on v7x (2 TensorCores) this keeps both cores busy even when N == 1.
    C = 2 if (n_s % 2 == 0 and n_s >= 2) else 1
    n_sc = n_s // C

    cparams_p1 = pltpu.CompilerParams(
        dimension_semantics=("parallel", "parallel", "arbitrary"),
        vmem_limit_bytes=vmem_limit)
    cparams_par = pltpu.CompilerParams(
        dimension_semantics=("parallel", "parallel"),
        vmem_limit_bytes=vmem_limit)

    # -------- pass 1: per-tile means + per-chunk centered Grams (GN16 stats) -------- #
    mg, mx, Gg, Gx = pl.pallas_call(
        _make_stats_kernel(BS12),
        out_shape=(jax.ShapeDtypeStruct((N, n_s, F_l, 1), jnp.float32),
                   jax.ShapeDtypeStruct((N, n_s, F_g, 1), jnp.float32),
                   jax.ShapeDtypeStruct((N, C, F_l, F_l), jnp.float32),
                   jax.ShapeDtypeStruct((N, C, F_g, F_g), jnp.float32)),
        grid_spec=pltpu.PrefetchScalarGridSpec(
            num_scalar_prefetch=0,
            grid=(N, C, n_sc),
            in_specs=[
                pl.BlockSpec((1, F_l, BS12), lambda n, c, s: (n, 0, c * n_sc + s)),
                pl.BlockSpec((1, F_g, BS12), lambda n, c, s: (n, 0, c * n_sc + s)),
            ],
            out_specs=[
                pl.BlockSpec((1, 1, F_l, 1), lambda n, c, s: (n, c * n_sc + s, 0, 0)),
                pl.BlockSpec((1, 1, F_g, 1), lambda n, c, s: (n, c * n_sc + s, 0, 0)),
                pl.BlockSpec((1, 1, F_l, F_l), lambda n, c, s: (n, c, 0, 0)),
                pl.BlockSpec((1, 1, F_g, F_g), lambda n, c, s: (n, c, 0, 0)),
            ]),
        compiler_params=cparams_p1,
    )(g3, x3)

    # --- tiny glue: pool tiles/chunks, project to conv-output channel stats,
    # --- and fold GroupNorm(16) into per-sample per-channel affines.
    wgt = params["wg"].T.astype(jnp.float32)      # (F_int, F_l)
    wxt = params["wx"].T.astype(jnp.float32)      # (F_int, F_g)
    bg = params["bg"].astype(jnp.float32)
    bx = params["bx"].astype(jnp.float32)

    def pooled_stats(m_tiles, grams, w, bias):
        # m_tiles: (N, T, K, 1) per-tile means (all tiles exactly BS12 wide);
        # grams:   (N, C, K, K) per-chunk tile-centered second-moment matrices.
        m_t = m_tiles[..., 0]                                  # (N, T, K)
        m_tot = jnp.mean(m_t, axis=1)                          # (N, K)
        d = m_t - m_tot[:, None, :]
        gram_tot = (jnp.sum(grams, axis=1)
                    + float(BS12) * jnp.einsum('ntf,ntg->nfg', d, d))
        mean_c = jnp.einsum('of,nf->no', w, m_tot) + bias[None, :]     # (N, F_int)
        var_c = jnp.einsum('of,nfg,og->no', w, gram_tot, w) / Sf       # (N, F_int)
        return mean_c, var_c

    mean_yg, var_yg = pooled_stats(mg, Gg, wgt, bg)
    mean_yx, var_yx = pooled_stats(mx, Gx, wxt, bx)

    def gn_affine(mu_c, v_c, gamma, beta):
        mu_r = mu_c.reshape(N, num_groups, cpg)
        v_r = v_c.reshape(N, num_groups, cpg)
        mu_grp = jnp.mean(mu_r, axis=-1)                                    # (N, G)
        var_grp = jnp.mean(v_r + (mu_r - mu_grp[..., None]) ** 2, axis=-1)  # (N, G)
        inv = jax.lax.rsqrt(var_grp + EPS)
        a = gamma[None, :] * jnp.repeat(inv, cpg, axis=-1)                  # (N, F_int)
        b = beta[None, :] - jnp.repeat(mu_grp, cpg, axis=-1) * a
        return a, b

    a_g, b_g = gn_affine(mean_yg, var_yg,
                         params["gng_w"].astype(jnp.float32),
                         params["gng_b"].astype(jnp.float32))
    a_x, b_x = gn_affine(mean_yx, var_yx,
                         params["gnx_w"].astype(jnp.float32),
                         params["gnx_b"].astype(jnp.float32))
    shift = a_g * bg[None, :] + b_g + a_x * bx[None, :] + b_x               # (N, F_int)

    # Fold the GN scales into the pass-2 matmul weights (removes two (F_int,BS)
    # vmuls per grid step from the VALU path).
    wgp = (a_g[:, :, None] * wgt[None]).astype(mm_dtype)        # (N, F_int, F_l)
    wxp = (a_x[:, :, None] * wxt[None]).astype(mm_dtype)        # (N, F_int, F_g)
    sh = shift.reshape(N, F_int, 1)
    wpsi_row = params["wpsi"].reshape(1, F_int).astype(jnp.float32)
    ab = jnp.stack([jnp.asarray(params["prelu"], jnp.float32).reshape(()),
                    jnp.asarray(params["bpsi"], jnp.float32).reshape(())]).reshape(1, 2)

    # ---------------- pass 2: psi pre-activation + its per-tile statistics ---------------- #
    p_raw, p_mt, p_m2t = pl.pallas_call(
        _make_mid_kernel(BS12),
        out_shape=(jax.ShapeDtypeStruct((N, 1, S), p_dtype),
                   jax.ShapeDtypeStruct((N, n_s, 1, 1), jnp.float32),
                   jax.ShapeDtypeStruct((N, n_s, 1, 1), jnp.float32)),
        grid_spec=pltpu.PrefetchScalarGridSpec(
            num_scalar_prefetch=0,
            grid=(N, n_s),
            in_specs=[
                pl.BlockSpec((1, F_l, BS12), lambda n, s: (n, 0, s)),
                pl.BlockSpec((1, F_g, BS12), lambda n, s: (n, 0, s)),
                pl.BlockSpec((1, F_int, F_l), lambda n, s: (n, 0, 0)),
                pl.BlockSpec((1, F_int, F_g), lambda n, s: (n, 0, 0)),
                pl.BlockSpec((1, F_int, 1), lambda n, s: (n, 0, 0)),
                pl.BlockSpec((1, F_int), lambda n, s: (0, 0)),
                pl.BlockSpec((1, 2), lambda n, s: (0, 0)),
            ],
            out_specs=[
                pl.BlockSpec((1, 1, BS12), lambda n, s: (n, 0, s)),
                pl.BlockSpec((1, 1, 1, 1), lambda n, s: (n, s, 0, 0)),
                pl.BlockSpec((1, 1, 1, 1), lambda n, s: (n, s, 0, 0)),
            ]),
        compiler_params=cparams_par,
    )(g3, x3, wgp, wxp, sh, wpsi_row, ab)

    # -------------- fold GroupNorm(1, 1) into a per-sample scale/shift -------------- #
    pm_t = p_mt[:, :, 0, 0]                                    # (N, n_s)
    p_mu = jnp.mean(pm_t, axis=1)                              # (N,)
    p_m2 = (jnp.sum(p_m2t[:, :, 0, 0], axis=1)
            + float(BS12) * jnp.sum((pm_t - p_mu[:, None]) ** 2, axis=1))
    p_var = p_m2 / Sf
    psc = (jnp.asarray(params["gnpsi_w"], jnp.float32).reshape(())
           * jax.lax.rsqrt(p_var + EPS))
    psh = jnp.asarray(params["gnpsi_b"], jnp.float32).reshape(()) - p_mu * psc
    ps = jnp.stack([psc, psh], axis=-1).reshape(N, 1, 2)

    # ---------------- pass 3: out = x * sigmoid(gn1(p)) ---------------- #
    out = pl.pallas_call(
        _apply_kernel,
        out_shape=jax.ShapeDtypeStruct((N, F_g, S), x.dtype),
        grid_spec=pltpu.PrefetchScalarGridSpec(
            num_scalar_prefetch=0,
            grid=(N, n_s3),
            in_specs=[
                pl.BlockSpec((1, F_g, BS3), lambda n, s: (n, 0, s)),
                pl.BlockSpec((1, 1, BS3), lambda n, s: (n, 0, s)),
                pl.BlockSpec((1, 1, 2), lambda n, s: (n, 0, 0)),
            ],
            out_specs=pl.BlockSpec((1, F_g, BS3), lambda n, s: (n, 0, s)),
        ),
        compiler_params=cparams_par,
    )(x3, p_raw, ps)

    return out.reshape(x.shape)


# --------------------------------------------------------------------------- #
# Plain-JAX reference mirroring the PyTorch module (NCDHW)
# --------------------------------------------------------------------------- #
def attention_block_reference(g, x, params, num_groups=16):
    def conv1(t, w, b):  # 1x1x1 conv: w is (Cin, Cout)
        return jnp.einsum('ncdhw,co->nodhw', t, w) + b[None, :, None, None, None]

    def gn(t, groups, w, b):
        N, C = t.shape[:2]
        tg = t.reshape(N, groups, -1)
        mu = tg.mean(axis=2, keepdims=True)
        var = ((tg - mu) ** 2).mean(axis=2, keepdims=True)
        tn = ((tg - mu) / jnp.sqrt(var + EPS)).reshape(t.shape)
        return tn * w[None, :, None, None, None] + b[None, :, None, None, None]

    g1 = gn(conv1(g, params["wg"], params["bg"]), num_groups,
            params["gng_w"], params["gng_b"])
    x1 = gn(conv1(x, params["wx"], params["bx"]), num_groups,
            params["gnx_w"], params["gnx_b"])
    h = g1 + x1
    h = jnp.where(h >= 0.0, h, params["prelu"] * h)
    p = conv1(h, params["wpsi"].reshape(-1, 1), params["bpsi"].reshape(1))
    p = gn(p, 1, params["gnpsi_w"].reshape(1), params["gnpsi_b"].reshape(1))
    p = jax.nn.sigmoid(p)
    return x * p


if __name__ == "__main__":
    def make_params(key, F_g, F_l, F_int):
        ks = jax.random.split(key, 10)
        return {
            "wg": 0.2 * jax.random.normal(ks[0], (F_l, F_int), jnp.float32),
            "bg": 0.1 * jax.random.normal(ks[1], (F_int,), jnp.float32),
            "gng_w": 1.0 + 0.1 * jax.random.normal(ks[2], (F_int,), jnp.float32),
            "gng_b": 0.05 * jax.random.normal(ks[3], (F_int,), jnp.float32),
            "wx": 0.2 * jax.random.normal(ks[4], (F_g, F_int), jnp.float32),
            "bx": 0.1 * jax.random.normal(ks[5], (F_int,), jnp.float32),
            "gnx_w": 1.0 + 0.1 * jax.random.normal(ks[6], (F_int,), jnp.float32),
            "gnx_b": 0.05 * jax.random.normal(ks[7], (F_int,), jnp.float32),
            "prelu": jnp.float32(0.25),                      # nn.PReLU() default
            "wpsi": 0.2 * jax.random.normal(ks[8], (F_int,), jnp.float32),
            "bpsi": 0.1 * jax.random.normal(ks[9], (1,), jnp.float32),
            "gnpsi_w": jnp.float32(1.1),
            "gnpsi_b": jnp.float32(0.02),
        }

    key = jax.random.PRNGKey(0)
    k1, k2, k3, k4, k5, k6 = jax.random.split(key, 6)

    # F_int must be divisible by 16 (GroupNorm(16, F_int)).
    F_g, F_l, F_int = 4, 4, 32

    # Case 1: N=2, single-tile path (S = 8*8*8 = 512).
    N, D, H, W = 2, 8, 8, 8
    g1_in = jax.random.normal(k1, (N, F_l, D, H, W), jnp.float32)
    x1_in = jax.random.normal(k2, (N, F_g, D, H, W), jnp.float32)
    params1 = make_params(k3, F_g, F_l, F_int)
    fwd1 = jax.jit(attention_block_pallas)
    out1 = jax.block_until_ready(fwd1(g1_in, x1_in, params1))
    ref1 = attention_block_reference(g1_in, x1_in, params1)
    assert out1.shape == x1_in.shape
    assert jnp.allclose(out1, ref1, rtol=5e-4, atol=1e-4), \
        f"case1 max abs diff {jnp.max(jnp.abs(out1 - ref1))}"

    # Case 2: N=1, multi-tile + chunked reduction path
    # (S = 8*16*16 = 2048, block forced to 512 -> 4 spatial tiles, 2 chunks).
    N, D, H, W = 1, 8, 16, 16
    g2_in = jax.random.normal(k4, (N, F_l, D, H, W), jnp.float32)
    x2_in = jax.random.normal(k5, (N, F_g, D, H, W), jnp.float32)
    params2 = make_params(k6, F_g, F_l, F_int)
    fwd2 = jax.jit(functools.partial(attention_block_pallas, max_block=512))
    out2 = jax.block_until_ready(fwd2(g2_in, x2_in, params2))
    ref2 = attention_block_reference(g2_in, x2_in, params2)
    assert out2.shape == x2_in.shape
    assert jnp.allclose(out2, ref2, rtol=5e-4, atol=1e-4), \
        f"case2 max abs diff {jnp.max(jnp.abs(out2 - ref2))}"

    print("KERNEL_OK")
</pallas_src>

<mosaic_0001>
module attributes {stable_mosaic.version = 11 : i64} {
  func.func @kernel(%arg0: i32, %arg1: i32, %arg2: i32, %arg3: memref<1x4x512xf32, #tpu.memory_space<vmem>>, %arg4: memref<1x4x512xf32, #tpu.memory_space<vmem>>, %arg5: memref<1x1x4x1xf32, #tpu.memory_space<vmem>>, %arg6: memref<1x1x4x1xf32, #tpu.memory_space<vmem>>, %arg7: memref<1x1x4x4xf32, #tpu.memory_space<vmem>>, %arg8: memref<1x1x4x4xf32, #tpu.memory_space<vmem>>) attributes {dimension_semantics = [#tpu.dimension_semantics<parallel>, #tpu.dimension_semantics<parallel>, #tpu.dimension_semantics<arbitrary>], iteration_bounds = array<i64: 2, 1, 1>, scalar_prefetch = 0 : i64, scratch_operands = 0 : i64, tpu.core_type = #tpu.core_type<tc>, window_params = [{transform_indices = @transform_0, window_bounds = array<i64: 1, 4, 512>}, {transform_indices = @transform_1, window_bounds = array<i64: 1, 4, 512>}, {transform_indices = @transform_2, window_bounds = array<i64: 1, 1, 4, 1>}, {transform_indices = @transform_3, window_bounds = array<i64: 1, 1, 4, 1>}, {transform_indices = @transform_4, window_bounds = array<i64: 1, 1, 4, 4>}, {transform_indices = @transform_5, window_bounds = array<i64: 1, 1, 4, 4>}]} {
    %c0 = arith.constant 0 : index
    %c0_0 = arith.constant 0 : index
    %c0_1 = arith.constant 0 : index
    %0 = vector.load %arg3[%c0, %c0_0, %c0_1] : memref<1x4x512xf32, #tpu.memory_space<vmem>>, vector<1x4x512xf32>
    %1 = vector.shape_cast %0 : vector<1x4x512xf32> to vector<4x512xf32>
    %cst = arith.constant dense<0.000000e+00> : vector<4xf32>
    %2 = vector.multi_reduction <add>, %1, %cst [1] : vector<4x512xf32> to vector<4xf32>
    %3 = vector.shape_cast %2 : vector<4xf32> to vector<4x1xf32>
    %cst_2 = arith.constant 0.001953125 : f32
    %4 = vector.broadcast %cst_2 : f32 to vector<4x1xf32>
    %5 = arith.mulf %3, %4 : vector<4x1xf32>
    %6 = vector.broadcast %5 : vector<4x1xf32> to vector<4x512xf32>
    %7 = arith.subf %1, %6 : vector<4x512xf32>
    %cst_3 = arith.constant dense<0.000000e+00> : vector<4x4xf32>
    %8 = tpu.matmul %7, %7, %cst_3 {dimension_numbers = #tpu.dot_dimension_numbers<[1], [1], [0], [0], [0, 0, 1, 0], [], []>} : vector<4x512xf32>, vector<4x512xf32>, vector<4x4xf32> -> vector<4x4xf32>
    %c0_4 = arith.constant 0 : index
    %c0_5 = arith.constant 0 : index
    %c0_6 = arith.constant 0 : index
    %c0_7 = arith.constant 0 : index
    %9 = vector.load %arg5[%c0_4, %c0_5, %c0_6, %c0_7] : memref<1x1x4x1xf32, #tpu.memory_space<vmem>>, vector<1x1x4x1xf32>
    %10 = vector.shape_cast %9 : vector<1x1x4x1xf32> to vector<4x1xf32>
    %11 = vector.shape_cast %5 : vector<4x1xf32> to vector<1x1x4x1xf32>
    tpu.vector_store %arg5[%c0_4, %c0_5, %c0_6, %c0_7], %11 {strides = array<i32>} : memref<1x1x4x1xf32, #tpu.memory_space<vmem>>, vector<1x1x4x1xf32>,
    %c0_i32 = arith.constant 0 : i32
    %12 = arith.cmpi eq, %arg2, %c0_i32 : i32
    %13 = arith.extui %12 : i1 to i32
    %c0_i32_8 = arith.constant 0 : i32
    %14 = arith.cmpi ne, %13, %c0_i32_8 : i32
    scf.if %14 {
      %c0_25 = arith.constant 0 : index
      %c0_26 = arith.constant 0 : index
      %c0_27 = arith.constant 0 : index
      %c0_28 = arith.constant 0 : index
      %36 = vector.load %arg7[%c0_25, %c0_26, %c0_27, %c0_28] : memref<1x1x4x4xf32, #tpu.memory_space<vmem>>, vector<1x1x4x4xf32>
      %37 = vector.shape_cast %36 : vector<1x1x4x4xf32> to vector<4x4xf32>
      %38 = vector.shape_cast %8 : vector<4x4xf32> to vector<1x1x4x4xf32>
      tpu.vector_store %arg7[%c0_25, %c0_26, %c0_27, %c0_28], %38 {strides = array<i32>} : memref<1x1x4x4xf32, #tpu.memory_space<vmem>>, vector<1x1x4x4xf32>,
    } else {
    }
    %c0_i32_9 = arith.constant 0 : i32
    %15 = arith.cmpi sgt, %arg2, %c0_i32_9 : i32
    %16 = arith.extui %15 : i1 to i32
    %c0_i32_10 = arith.constant 0 : i32
    %17 = arith.cmpi ne, %16, %c0_i32_10 : i32
    scf.if %17 {
      %c0_25 = arith.constant 0 : index
      %c0_26 = arith.constant 0 : index
      %c0_27 = arith.constant 0 : index
      %c0_28 = arith.constant 0 : index
      %36 = vector.load %arg7[%c0_25, %c0_26, %c0_27, %c0_28] : memref<1x1x4x4xf32, #tpu.memory_space<vmem>>, vector<1x1x4x4xf32>
      %37 = vector.shape_cast %36 : vector<1x1x4x4xf32> to vector<4x4xf32>
      %38 = arith.addf %37, %8 : vector<4x4xf32>
      %c0_29 = arith.constant 0 : index
      %c0_30 = arith.constant 0 : index
      %c0_31 = arith.constant 0 : index
      %c0_32 = arith.constant 0 : index
      %39 = vector.load %arg7[%c0_29, %c0_30, %c0_31, %c0_32] : memref<1x1x4x4xf32, #tpu.memory_space<vmem>>, vector<1x1x4x4xf32>
      %40 = vector.shape_cast %39 : vector<1x1x4x4xf32> to vector<4x4xf32>
      %41 = vector.shape_cast %38 : vector<4x4xf32> to vector<1x1x4x4xf32>
      tpu.vector_store %arg7[%c0_29, %c0_30, %c0_31, %c0_32], %41 {strides = array<i32>} : memref<1x1x4x4xf32, #tpu.memory_space<vmem>>, vector<1x1x4x4xf32>,
    } else {
    }
    %c0_11 = arith.constant 0 : index
    %c0_12 = arith.constant 0 : index
    %c0_13 = arith.constant 0 : index
    %18 = vector.load %arg4[%c0_11, %c0_12, %c0_13] : memref<1x4x512xf32, #tpu.memory_space<vmem>>, vector<1x4x512xf32>
    %19 = vector.shape_cast %18 : vector<1x4x512xf32> to vector<4x512xf32>
    %cst_14 = arith.constant dense<0.000000e+00> : vector<4xf32>
    %20 = vector.multi_reduction <add>, %19, %cst_14 [1] : vector<4x512xf32> to vector<4xf32>
    %21 = vector.shape_cast %20 : vector<4xf32> to vector<4x1xf32>
    %cst_15 = arith.constant 0.001953125 : f32
    %22 = vector.broadcast %cst_15 : f32 to vector<4x1xf32>
    %23 = arith.mulf %21, %22 : vector<4x1xf32>
    %24 = vector.broadcast %23 : vector<4x1xf32> to vector<4x512xf32>
    %25 = arith.subf %19, %24 : vector<4x512xf32>
    %cst_16 = arith.constant dense<0.000000e+00> : vector<4x4xf32>
    %26 = tpu.matmul %25, %25, %cst_16 {dimension_numbers = #tpu.dot_dimension_numbers<[1], [1], [0], [0], [0, 0, 1, 0], [], []>} : vector<4x512xf32>, vector<4x512xf32>, vector<4x4xf32> -> vector<4x4xf32>
    %c0_17 = arith.constant 0 : index
    %c0_18 = arith.constant 0 : index
    %c0_19 = arith.constant 0 : index
    %c0_20 = arith.constant 0 : index
    %27 = vector.load %arg6[%c0_17, %c0_18, %c0_19, %c0_20] : memref<1x1x4x1xf32, #tpu.memory_space<vmem>>, vector<1x1x4x1xf32>
    %28 = vector.shape_cast %27 : vector<1x1x4x1xf32> to vector<4x1xf32>
    %29 = vector.shape_cast %23 : vector<4x1xf32> to vector<1x1x4x1xf32>
    tpu.vector_store %arg6[%c0_17, %c0_18, %c0_19, %c0_20], %29 {strides = array<i32>} : memref<1x1x4x1xf32, #tpu.memory_space<vmem>>, vector<1x1x4x1xf32>,
    %c0_i32_21 = arith.constant 0 : i32
    %30 = arith.cmpi eq, %arg2, %c0_i32_21 : i32
    %31 = arith.extui %30 : i1 to i32
    %c0_i32_22 = arith.constant 0 : i32
    %32 = arith.cmpi ne, %31, %c0_i32_22 : i32
    scf.if %32 {
      %c0_25 = arith.constant 0 : index
      %c0_26 = arith.constant 0 : index
      %c0_27 = arith.constant 0 : index
      %c0_28 = arith.constant 0 : index
      %36 = vector.load %arg8[%c0_25, %c0_26, %c0_27, %c0_28] : memref<1x1x4x4xf32, #tpu.memory_space<vmem>>, vector<1x1x4x4xf32>
      %37 = vector.shape_cast %36 : vector<1x1x4x4xf32> to vector<4x4xf32>
      %38 = vector.shape_cast %26 : vector<4x4xf32> to vector<1x1x4x4xf32>
      tpu.vector_store %arg8[%c0_25, %c0_26, %c0_27, %c0_28], %38 {strides = array<i32>} : memref<1x1x4x4xf32, #tpu.memory_space<vmem>>, vector<1x1x4x4xf32>,
    } else {
    }
    %c0_i32_23 = arith.constant 0 : i32
    %33 = arith.cmpi sgt, %arg2, %c0_i32_23 : i32
    %34 = arith.extui %33 : i1 to i32
    %c0_i32_24 = arith.constant 0 : i32
    %35 = arith.cmpi ne, %34, %c0_i32_24 : i32
    scf.if %35 {
      %c0_25 = arith.constant 0 : index
      %c0_26 = arith.constant 0 : index
      %c0_27 = arith.constant 0 : index
      %c0_28 = arith.constant 0 : index
      %36 = vector.load %arg8[%c0_25, %c0_26, %c0_27, %c0_28] : memref<1x1x4x4xf32, #tpu.memory_space<vmem>>, vector<1x1x4x4xf32>
      %37 = vector.shape_cast %36 : vector<1x1x4x4xf32> to vector<4x4xf32>
      %38 = arith.addf %37, %26 : vector<4x4xf32>
      %c0_29 = arith.constant 0 : index
      %c0_30 = arith.constant 0 : index
      %c0_31 = arith.constant 0 : index
      %c0_32 = arith.constant 0 : index
      %39 = vector.load %arg8[%c0_29, %c0_30, %c0_31, %c0_32] : memref<1x1x4x4xf32, #tpu.memory_space<vmem>>, vector<1x1x4x4xf32>
      %40 = vector.shape_cast %39 : vector<1x1x4x4xf32> to vector<4x4xf32>
      %41 = vector.shape_cast %38 : vector<4x4xf32> to vector<1x1x4x4xf32>
      tpu.vector_store %arg8[%c0_29, %c0_30, %c0_31, %c0_32], %41 {strides = array<i32>} : memref<1x1x4x4xf32, #tpu.memory_space<vmem>>, vector<1x1x4x4xf32>,
    } else {
    }
    return
  }
  func.func @transform_0(%arg0: i32, %arg1: i32, %arg2: i32) -> (i32, i32, i32) {
    %c1_i32 = arith.constant 1 : i32
    %0 = arith.muli %arg1, %c1_i32 : i32
    %1 = arith.addi %0, %arg2 : i32
    %c0_i32 = arith.constant 0 : i32
    %c0_i32_0 = arith.constant 0 : i32
    return %arg0, %c0_i32, %1 : i32, i32, i32
  }
  func.func @transform_1(%arg0: i32, %arg1: i32, %arg2: i32) -> (i32, i32, i32) {
    %c1_i32 = arith.constant 1 : i32
    %0 = arith.muli %arg1, %c1_i32 : i32
    %1 = arith.addi %0, %arg2 : i32
    %c0_i32 = arith.constant 0 : i32
    %c0_i32_0 = arith.constant 0 : i32
    return %arg0, %c0_i32, %1 : i32, i32, i32
  }
  func.func @transform_2(%arg0: i32, %arg1: i32, %arg2: i32) -> (i32, i32, i32, i32) {
    %c1_i32 = arith.constant 1 : i32
    %0 = arith.muli %arg1, %c1_i32 : i32
    %1 = arith.addi %0, %arg2 : i32
    %c0_i32 = arith.constant 0 : i32
    %c0_i32_0 = arith.constant 0 : i32
    %c0_i32_1 = arith.constant 0 : i32
    return %arg0, %1, %c0_i32, %c0_i32_0 : i32, i32, i32, i32
  }
  func.func @transform_3(%arg0: i32, %arg1: i32, %arg2: i32) -> (i32, i32, i32, i32) {
    %c1_i32 = arith.constant 1 : i32
    %0 = arith.muli %arg1, %c1_i32 : i32
    %1 = arith.addi %0, %arg2 : i32
    %c0_i32 = arith.constant 0 : i32
    %c0_i32_0 = arith.constant 0 : i32
    %c0_i32_1 = arith.constant 0 : i32
    return %arg0, %1, %c0_i32, %c0_i32_0 : i32, i32, i32, i32
  }
  func.func @transform_4(%arg0: i32, %arg1: i32, %arg2: i32) -> (i32, i32, i32, i32) {
    %c0_i32 = arith.constant 0 : i32
    %c0_i32_0 = arith.constant 0 : i32
    %c0_i32_1 = arith.constant 0 : i32
    return %arg0, %arg1, %c0_i32, %c0_i32_0 : i32, i32, i32, i32
  }
  func.func @transform_5(%arg0: i32, %arg1: i32, %arg2: i32) -> (i32, i32, i32, i32) {
    %c0_i32 = arith.constant 0 : i32
    %c0_i32_0 = arith.constant 0 : i32
    %c0_i32_1 = arith.constant 0 : i32
    return %arg0, %arg1, %c0_i32, %c0_i32_0 : i32, i32, i32, i32
  }
}

module attributes {stable_mosaic.version = 11 : i64} {
  func.func @_apply_kernel(%arg0: i32, %arg1: i32, %arg2: memref<1x4x512xf32, #tpu.memory_space<vmem>>, %arg3: memref<1x1x512xf32, #tpu.memory_space<vmem>>, %arg4: memref<1x1x2xf32, #tpu.memory_space<vmem>>, %arg5: memref<1x4x512xf32, #tpu.memory_space<vmem>>) attributes {dimension_semantics = [#tpu.dimension_semantics<parallel>, #tpu.dimension_semantics<parallel>], iteration_bounds = array<i64: 2, 1>, scalar_prefetch = 0 : i64, scratch_operands = 0 : i64, tpu.core_type = #tpu.core_type<tc>, window_params = [{transform_indices = @transform_0, window_bounds = array<i64: 1, 4, 512>}, {transform_indices = @transform_1, window_bounds = array<i64: 1, 1, 512>}, {transform_indices = @transform_2, window_bounds = array<i64: 1, 1, 2>}, {transform_indices = @transform_3, window_bounds = array<i64: 1, 4, 512>}]} {
    %c0 = arith.constant 0 : index
    %c0_0 = arith.constant 0 : index
    %c0_1 = arith.constant 0 : index
    %0 = vector.load %arg4[%c0, %c0_0, %c0_1] : memref<1x1x2xf32, #tpu.memory_space<vmem>>, vector<1x1x1xf32>
    %1 = vector.shape_cast %0 : vector<1x1x1xf32> to vector<1x1xf32>
    %c0_2 = arith.constant 0 : index
    %c0_3 = arith.constant 0 : index
    %c1 = arith.constant 1 : index
    %2 = vector.load %arg4[%c0_2, %c0_3, %c1] : memref<1x1x2xf32, #tpu.memory_space<vmem>>, vector<1x1x1xf32>
    %3 = vector.shape_cast %2 : vector<1x1x1xf32> to vector<1x1xf32>
    %c0_4 = arith.constant 0 : index
    %c0_5 = arith.constant 0 : index
    %c0_6 = arith.constant 0 : index
    %4 = vector.load %arg3[%c0_4, %c0_5, %c0_6] : memref<1x1x512xf32, #tpu.memory_space<vmem>>, vector<1x1x512xf32>
    %5 = vector.shape_cast %4 : vector<1x1x512xf32> to vector<1x512xf32>
    %6 = vector.broadcast %1 : vector<1x1xf32> to vector<1x512xf32>
    %7 = arith.mulf %5, %6 : vector<1x512xf32>
    %8 = vector.broadcast %3 : vector<1x1xf32> to vector<1x512xf32>
    %9 = arith.addf %7, %8 : vector<1x512xf32>
    %10 = arith.negf %9 : vector<1x512xf32>
    %11 = math.exp %10 : vector<1x512xf32>
    %cst = arith.constant 1.000000e+00 : f32
    %12 = vector.broadcast %cst : f32 to vector<1x512xf32>
    %13 = arith.addf %12, %11 : vector<1x512xf32>
    %14 = arith.divf %12, %13 : vector<1x512xf32>
    %c0_7 = arith.constant 0 : index
    %c0_8 = arith.constant 0 : index
    %c0_9 = arith.constant 0 : index
    %15 = vector.load %arg2[%c0_7, %c0_8, %c0_9] : memref<1x4x512xf32, #tpu.memory_space<vmem>>, vector<1x4x512xf32>
    %16 = vector.shape_cast %15 : vector<1x4x512xf32> to vector<4x512xf32>
    %17 = vector.broadcast %14 : vector<1x512xf32> to vector<4x512xf32>
    %18 = arith.mulf %16, %17 : vector<4x512xf32>
    %c0_10 = arith.constant 0 : index
    %c0_11 = arith.constant 0 : index
    %c0_12 = arith.constant 0 : index
    %19 = vector.load %arg5[%c0_10, %c0_11, %c0_12] : memref<1x4x512xf32, #tpu.memory_space<vmem>>, vector<1x4x512xf32>
    %20 = vector.shape_cast %19 : vector<1x4x512xf32> to vector<4x512xf32>
    %21 = vector.shape_cast %18 : vector<4x512xf32> to vector<1x4x512xf32>
    tpu.vector_store %arg5[%c0_10, %c0_11, %c0_12], %21 {strides = array<i32>} : memref<1x4x512xf32, #tpu.memory_space<vmem>>, vector<1x4x512xf32>,
    return
  }
  func.func @transform_0(%arg0: i32, %arg1: i32) -> (i32, i32, i32) {
    %c0_i32 = arith.constant 0 : i32
    %c0_i32_0 = arith.constant 0 : i32
    return %arg0, %c0_i32, %arg1 : i32, i32, i32
  }
  func.func @transform_1(%arg0: i32, %arg1: i32) -> (i32, i32, i32) {
    %c0_i32 = arith.constant 0 : i32
    %c0_i32_0 = arith.constant 0 : i32
    return %arg0, %c0_i32, %arg1 : i32, i32, i32
  }
  func.func @transform_2(%arg0: i32, %arg1: i32) -> (i32, i32, i32) {
    %c0_i32 = arith.constant 0 : i32
    %c0_i32_0 = arith.constant 0 : i32
    %c0_i32_1 = arith.constant 0 : i32
    return %arg0, %c0_i32, %c0_i32_0 : i32, i32, i32
  }
  func.func @transform_3(%arg0: i32, %arg1: i32) -> (i32, i32, i32) {
    %c0_i32 = arith.constant 0 : i32
    %c0_i32_0 = arith.constant 0 : i32
    return %arg0, %c0_i32, %arg1 : i32, i32, i32
  }
}

module attributes {stable_mosaic.version = 11 : i64} {
  func.func @kernel(%arg0: i32, %arg1: i32, %arg2: memref<1x4x512xf32, #tpu.memory_space<vmem>>, %arg3: memref<1x4x512xf32, #tpu.memory_space<vmem>>, %arg4: memref<1x32x4xf32, #tpu.memory_space<vmem>>, %arg5: memref<1x32x4xf32, #tpu.memory_space<vmem>>, %arg6: memref<1x32x1xf32, #tpu.memory_space<vmem>>, %arg7: memref<1x32xf32, #tpu.memory_space<vmem>>, %arg8: memref<1x2xf32, #tpu.memory_space<vmem>>, %arg9: memref<1x1x512xf32, #tpu.memory_space<vmem>>, %arg10: memref<1x1x1x1xf32, #tpu.memory_space<vmem>>, %arg11: memref<1x1x1x1xf32, #tpu.memory_space<vmem>>) attributes {dimension_semantics = [#tpu.dimension_semantics<parallel>, #tpu.dimension_semantics<parallel>], iteration_bounds = array<i64: 2, 1>, scalar_prefetch = 0 : i64, scratch_operands = 0 : i64, tpu.core_type = #tpu.core_type<tc>, window_params = [{transform_indices = @transform_0, window_bounds = array<i64: 1, 4, 512>}, {transform_indices = @transform_1, window_bounds = array<i64: 1, 4, 512>}, {transform_indices = @transform_2, window_bounds = array<i64: 1, 32, 4>}, {transform_indices = @transform_3, window_bounds = array<i64: 1, 32, 4>}, {transform_indices = @transform_4, window_bounds = array<i64: 1, 32, 1>}, {pipeline_mode = #tpu.pipeline_mode<synchronous>, transform_indices = @transform_5, window_bounds = array<i64: 1, 32>}, {pipeline_mode = #tpu.pipeline_mode<synchronous>, transform_indices = @transform_6, window_bounds = array<i64: 1, 2>}, {transform_indices = @transform_7, window_bounds = array<i64: 1, 1, 512>}, {transform_indices = @transform_8, window_bounds = array<i64: 1, 1, 1, 1>}, {transform_indices = @transform_9, window_bounds = array<i64: 1, 1, 1, 1>}]} {
    %c0 = arith.constant 0 : index
    %c0_0 = arith.constant 0 : index
    %c0_1 = arith.constant 0 : index
    %0 = vector.load %arg4[%c0, %c0_0, %c0_1] : memref<1x32x4xf32, #tpu.memory_space<vmem>>, vector<1x32x4xf32>
    %1 = vector.shape_cast %0 : vector<1x32x4xf32> to vector<32x4xf32>
    %c0_2 = arith.constant 0 : index
    %c0_3 = arith.constant 0 : index
    %c0_4 = arith.constant 0 : index
    %2 = vector.load %arg2[%c0_2, %c0_3, %c0_4] : memref<1x4x512xf32, #tpu.memory_space<vmem>>, vector<1x4x512xf32>
    %3 = vector.shape_cast %2 : vector<1x4x512xf32> to vector<4x512xf32>
    %cst = arith.constant dense<0.000000e+00> : vector<32x512xf32>
    %4 = tpu.matmul %1, %3, %cst {dimension_numbers = #tpu.dot_dimension_numbers<[1], [0], [0], [1], [0, 0, 1, 1], [], []>} : vector<32x4xf32>, vector<4x512xf32>, vector<32x512xf32> -> vector<32x512xf32>
    %c0_5 = arith.constant 0 : index
    %c0_6 = arith.constant 0 : index
    %c0_7 = arith.constant 0 : index
    %5 = vector.load %arg5[%c0_5, %c0_6, %c0_7] : memref<1x32x4xf32, #tpu.memory_space<vmem>>, vector<1x32x4xf32>
    %6 = vector.shape_cast %5 : vector<1x32x4xf32> to vector<32x4xf32>
    %c0_8 = arith.constant 0 : index
    %c0_9 = arith.constant 0 : index
    %c0_10 = arith.constant 0 : index
    %7 = vector.load %arg3[%c0_8, %c0_9, %c0_10] : memref<1x4x512xf32, #tpu.memory_space<vmem>>, vector<1x4x512xf32>
    %8 = vector.shape_cast %7 : vector<1x4x512xf32> to vector<4x512xf32>
    %cst_11 = arith.constant dense<0.000000e+00> : vector<32x512xf32>
    %9 = tpu.matmul %6, %8, %cst_11 {dimension_numbers = #tpu.dot_dimension_numbers<[1], [0], [0], [1], [0, 0, 1, 1], [], []>} : vector<32x4xf32>, vector<4x512xf32>, vector<32x512xf32> -> vector<32x512xf32>
    %10 = arith.addf %4, %9 : vector<32x512xf32>
    %c0_12 = arith.constant 0 : index
    %c0_13 = arith.constant 0 : index
    %c0_14 = arith.constant 0 : index
    %11 = vector.load %arg6[%c0_12, %c0_13, %c0_14] : memref<1x32x1xf32, #tpu.memory_space<vmem>>, vector<1x32x1xf32>
    %12 = vector.shape_cast %11 : vector<1x32x1xf32> to vector<32x1xf32>
    %13 = vector.broadcast %12 : vector<32x1xf32> to vector<32x512xf32>
    %14 = arith.addf %10, %13 : vector<32x512xf32>
    %c0_15 = arith.constant 0 : index
    %c0_16 = arith.constant 0 : index
    %15 = vector.load %arg8[%c0_15, %c0_16] : memref<1x2xf32, #tpu.memory_space<vmem>>, vector<1x1xf32>
    %c0_17 = arith.constant 0 : index
    %c1 = arith.constant 1 : index
    %16 = vector.load %arg8[%c0_17, %c1] : memref<1x2xf32, #tpu.memory_space<vmem>>, vector<1x1xf32>
    %cst_18 = arith.constant 0.000000e+00 : f32
    %17 = vector.broadcast %cst_18 : f32 to vector<32x512xf32>
    %18 = arith.cmpf oge, %14, %17 : vector<32x512xf32>
    %19 = vector.broadcast %15 : vector<1x1xf32> to vector<32x512xf32>
    %20 = arith.mulf %19, %14 : vector<32x512xf32>
    %21 = arith.select %18, %14, %20 : vector<32x512xi1>, vector<32x512xf32>
    %c0_19 = arith.constant 0 : index
    %c0_20 = arith.constant 0 : index
    %22 = vector.load %arg7[%c0_19, %c0_20] : memref<1x32xf32, #tpu.memory_space<vmem>>, vector<1x32xf32>
    %cst_21 = arith.constant dense<0.000000e+00> : vector<1x512xf32>
    %23 = tpu.matmul %22, %21, %cst_21 {dimension_numbers = #tpu.dot_dimension_numbers<[1], [0], [0], [1], [0, 0, 1, 1], [], []>} : vector<1x32xf32>, vector<32x512xf32>, vector<1x512xf32> -> vector<1x512xf32>
    %24 = vector.broadcast %16 : vector<1x1xf32> to vector<1x512xf32>
    %25 = arith.addf %23, %24 : vector<1x512xf32>
    %c0_22 = arith.constant 0 : index
    %c0_23 = arith.constant 0 : index
    %c0_24 = arith.constant 0 : index
    %26 = vector.load %arg9[%c0_22, %c0_23, %c0_24] : memref<1x1x512xf32, #tpu.memory_space<vmem>>, vector<1x1x512xf32>
    %27 = vector.shape_cast %26 : vector<1x1x512xf32> to vector<1x512xf32>
    %28 = vector.shape_cast %25 : vector<1x512xf32> to vector<1x1x512xf32>
    tpu.vector_store %arg9[%c0_22, %c0_23, %c0_24], %28 {strides = array<i32>} : memref<1x1x512xf32, #tpu.memory_space<vmem>>, vector<1x1x512xf32>,
    %cst_25 = arith.constant dense<0.000000e+00> : vector<1xf32>
    %29 = vector.multi_reduction <add>, %25, %cst_25 [1] : vector<1x512xf32> to vector<1xf32>
    %30 = vector.shape_cast %29 : vector<1xf32> to vector<1x1xf32>
    %cst_26 = arith.constant 0.001953125 : f32
    %31 = vector.broadcast %cst_26 : f32 to vector<1x1xf32>
    %32 = arith.mulf %30, %31 : vector<1x1xf32>
    %33 = vector.broadcast %32 : vector<1x1xf32> to vector<1x512xf32>
    %34 = arith.subf %25, %33 : vector<1x512xf32>
    %c0_27 = arith.constant 0 : index
    %c0_28 = arith.constant 0 : index
    %c0_29 = arith.constant 0 : index
    %c0_30 = arith.constant 0 : index
    %35 = vector.load %arg10[%c0_27, %c0_28, %c0_29, %c0_30] : memref<1x1x1x1xf32, #tpu.memory_space<vmem>>, vector<1x1x1x1xf32>
    %36 = vector.shape_cast %35 : vector<1x1x1x1xf32> to vector<1x1xf32>
    %37 = vector.shape_cast %32 : vector<1x1xf32> to vector<1x1x1x1xf32>
    tpu.vector_store %arg10[%c0_27, %c0_28, %c0_29, %c0_30], %37 {strides = array<i32>} : memref<1x1x1x1xf32, #tpu.memory_space<vmem>>, vector<1x1x1x1xf32>,
    %38 = arith.mulf %34, %34 : vector<1x512xf32>
    %cst_31 = arith.constant dense<0.000000e+00> : vector<1xf32>
    %39 = vector.multi_reduction <add>, %38, %cst_31 [1] : vector<1x512xf32> to vector<1xf32>
    %40 = vector.shape_cast %39 : vector<1xf32> to vector<1x1xf32>
    %c0_32 = arith.constant 0 : index
    %c0_33 = arith.constant 0 : index
    %c0_34 = arith.constant 0 : index
    %c0_35 = arith.constant 0 : index
    %41 = vector.load %arg11[%c0_32, %c0_33, %c0_34, %c0_35] : memref<1x1x1x1xf32, #tpu.memory_space<vmem>>, vector<1x1x1x1xf32>
    %42 = vector.shape_cast %41 : vector<1x1x1x1xf32> to vector<1x1xf32>
    %43 = vector.shape_cast %40 : vector<1x1xf32> to vector<1x1x1x1xf32>
    tpu.vector_store %arg11[%c0_32, %c0_33, %c0_34, %c0_35], %43 {strides = array<i32>} : memref<1x1x1x1xf32, #tpu.memory_space<vmem>>, vector<1x1x1x1xf32>,
    return
  }
  func.func @transform_0(%arg0: i32, %arg1: i32) -> (i32, i32, i32) {
    %c0_i32 = arith.constant 0 : i32
    %c0_i32_0 = arith.constant 0 : i32
    return %arg0, %c0_i32, %arg1 : i32, i32, i32
  }
  func.func @transform_1(%arg0: i32, %arg1: i32) -> (i32, i32, i32) {
    %c0_i32 = arith.constant 0 : i32
    %c0_i32_0 = arith.constant 0 : i32
    return %arg0, %c0_i32, %arg1 : i32, i32, i32
  }
  func.func @transform_2(%arg0: i32, %arg1: i32) -> (i32, i32, i32) {
    %c0_i32 = arith.constant 0 : i32
    %c0_i32_0 = arith.constant 0 : i32
    %c0_i32_1 = arith.constant 0 : i32
    return %arg0, %c0_i32, %c0_i32_0 : i32, i32, i32
  }
  func.func @transform_3(%arg0: i32, %arg1: i32) -> (i32, i32, i32) {
    %c0_i32 = arith.constant 0 : i32
    %c0_i32_0 = arith.constant 0 : i32
    %c0_i32_1 = arith.constant 0 : i32
    return %arg0, %c0_i32, %c0_i32_0 : i32, i32, i32
  }
  func.func @transform_4(%arg0: i32, %arg1: i32) -> (i32, i32, i32) {
    %c0_i32 = arith.constant 0 : i32
    %c0_i32_0 = arith.constant 0 : i32
    %c0_i32_1 = arith.constant 0 : i32
    return %arg0, %c0_i32, %c0_i32_0 : i32, i32, i32
  }
  func.func @transform_5(%arg0: i32, %arg1: i32) -> (i32, i32) {
    %c0_i32 = arith.constant 0 : i32
    %c0_i32_0 = arith.constant 0 : i32
    %c0_i32_1 = arith.constant 0 : i32
    return %c0_i32, %c0_i32_0 : i32, i32
  }
  func.func @transform_6(%arg0: i32, %arg1: i32) -> (i32, i32) {
    %c0_i32 = arith.constant 0 : i32
    %c0_i32_0 = arith.constant 0 : i32
    %c0_i32_1 = arith.constant 0 : i32
    return %c0_i32, %c0_i32_0 : i32, i32
  }
  func.func @transform_7(%arg0: i32, %arg1: i32) -> (i32, i32, i32) {
    %c0_i32 = arith.constant 0 : i32
    %c0_i32_0 = arith.constant 0 : i32
    return %arg0, %c0_i32, %arg1 : i32, i32, i32
  }
  func.func @transform_8(%arg0: i32, %arg1: i32) -> (i32, i32, i32, i32) {
    %c0_i32 = arith.constant 0 : i32
    %c0_i32_0 = arith.constant 0 : i32
    %c0_i32_1 = arith.constant 0 : i32
    return %arg0, %arg1, %c0_i32, %c0_i32_0 : i32, i32, i32, i32
  }
  func.func @transform_9(%arg0: i32, %arg1: i32) -> (i32, i32, i32, i32) {
    %c0_i32 = arith.constant 0 : i32
    %c0_i32_0 = arith.constant 0 : i32
    %c0_i32_1 = arith.constant 0 : i32
    return %arg0, %arg1, %c0_i32, %c0_i32_0 : i32, i32, i32, i32
  }
}

</mosaic_0001>

<bundles_post_ra>
// kernel: sub.7
= control target key start
LH: loop header
LB: loop body
LE: loop exit
PB: predicated region body
PF: predicated region fallthrough
CT: control target
= control target key end

     0   :  { %s34_s0 = inlined_call_operand.vmem [shape: f32[2,4], index: 0, kind: input, shape index: {}, may-alias: {0,1}]   ;;  %s35_s1 = inlined_call_operand.vmem [shape: f32[2,4], index: 1, kind: input, shape index: {}, may-alias: {0,1}]   ;;  %s36_s2 = inlined_call_operand.vmem [shape: f32[2,4], index: 2, kind: output, shape index: {}]  }
   0x1   :  { %v3_v0 = vld [vmem:[%s34_s0] sm:$0x3] }
   0x2   :  { %v4_v1 = vld [vmem:[%s35_s1] sm:$0x3] }
   0x3   :  { %v7_v2 = vsub.f32 %v3_v0, %v4_v1 }
   0x5   :  { %9 = vst [vmem:[%s36_s2] sm:$0x3] %v7_v2 }

// kernel: attention_block_pallas.3
= control target key start
LH: loop header
LB: loop body
LE: loop exit
PB: predicated region body
PF: predicated region fallthrough
CT: control target
= control target key end

     0   :  { %s1094_s18 = smov 0   ;;  %s1096_s19 = smov 0   ;;  %s1157_s0 = inlined_call_operand.vmem [shape: f32[2,4,512], index: 0, kind: input, shape index: {}]   ;;  %s1158_s1 = inlined_call_operand.vmem [shape: f32[2,4,512], index: 1, kind: input, shape index: {}]   ;;  %s1159_s2 = inlined_call_operand.vmem [shape: f32[2,1,4,1], index: 2, kind: output, shape index: {0}]   ;;  %s1160_s3 = inlined_call_operand.vmem [shape: f32[2,1,4,1], index: 3, kind: output, shape index: {1}]   ;;  %s1161_s4 = inlined_call_operand.vmem [shape: f32[2,1,4,4], index: 4, kind: output, shape index: {2}]   ;;  %s1162_s5 = inlined_call_operand.vmem [shape: f32[2,1,4,4], index: 5, kind: output, shape index: {3}]  }
   0x1   :  { %s1098_s20 = smov 0  }
   0x2 LB: > { %s35_s21 = sadd.s32 1, %s1057_s19  ;;  %p993_p0 = scmp.ge.s32.totalorder %s1061_s20, 1  ;;  %s1061_s20 = sphi %s1098_s20, %s16_s20   ;;  %s1057_s19 = sphi %s1096_s19, %s1164_s19   ;;  %s1053_s18 = sphi %s1094_s18, %s1163_s18  }
   0x3   : > { %p37_p1 = scmp.ge.s32.totalorder %s35_s21, 2  ;;  %p257_p2 = scmp.lt.s32.totalorder %s1061_s20, 3 }
   0x5   : > { %s1166_s21 = smov (%p37_p1, %s35_s21), 0  ;;  %p258_p3 = pnand %p993_p0, %p257_p2 }
   0x6   : > { %p327_p4 = scmp.lt.s32.totalorder (!%p258_p3), %s1053_s18, 1  ;;  %vm389_vm0 = vcmask (!%p258_p3), 1043456   ;;  %v1063_v22 = vmov (!%p258_p3), 839922192   ;;  %v404_v24 = vlaneseq (!%p258_p3)  ;;  %vm557_vm1 = vcmask (!%p258_p3), 3072  }
   0x7   : > { %261 = sbr.rel (%p258_p3) target bundleno = 407 (0x197), region = 28  ;;  %v402_v23 = vunpack.c.l.s4 (!%p258_p3), %v1063_v22  ;;  %vm563_vm2 = vcmask (!%p258_p3), 27648  }
   0x8   : > { %v405_v26 = vshrl.u32 (!%p258_p3), %v404_v24, 7 }
   0x9   : > { %v403_v25 = vunpack.c.0.s8 (!%p258_p3), %v402_v23 }
   0xb   : > { %v406_v27 = vsub.s32 (!%p258_p3), %v403_v25, %v405_v26 }
   0xe   : > { %s1168_s18 = smov (!%p327_p4, %s1053_s18), 1 }
   0xf   : > { %s1004_s22 = sshll.u32 %s1168_s18, 4  ;;  %s1130_s29 = sshll.u32 %s1168_s18, 2 }
  0x10   : > { %s334_s25 = scalar_lea.vmem %s1157_s0, %s1004_s22  ;;  %s346_s28 = scalar_lea.vmem %s1158_s1, %s1004_s22 }
  0x11   : > { %v381_v0 = vld [vmem:[%s334_s25] sm:$0xff]  ;;  %v382_v1 = vld [vmem:[%s334_s25 + $0x8] sm:$0xff]  ;;  %s356_s7 = scalar_lea.vmem %s1159_s2, %s1130_s29  ;;  %s365_s10 = scalar_lea.vmem %s1160_s3, %s1130_s29 }
  0x12   : > { %v573_v2 = vld [vmem:[%s346_s28] sm:$0xff]  ;;  %v385_v3 = vcombine.high %v381_v0, %v381_v0  ;;  %v386_v4 = vcombine.high %v382_v1, %v382_v1  ;;  %v390_v5 = vsel %vm389_vm0, %v381_v0, 0.0  ;;  %v574_v6 = vld [vmem:[%s346_s28 + $0x8] sm:$0xff]  ;;  %v393_v10 = vsel %vm389_vm0, %v382_v1, 0.0  ;;  %s373_s13 = scalar_lea.vmem %s1161_s4, %s1130_s29  ;;  %s380_s16 = scalar_lea.vmem %s1162_s5, %s1130_s29 }
  0x13   : > { %v577_v7 = vcombine.high %v573_v2, %v573_v2  ;;  %v581_v8 = vsel %vm389_vm0, %v573_v2, 0.0  ;;  %v578_v11 = vcombine.high %v574_v6, %v574_v6  ;;  %v584_v14 = vsel %vm389_vm0, %v574_v6, 0.0 }
  0x14   : > { %v391_v9 = vsel %vm389_vm0, %v385_v3, 0.0  ;;  %v395_v15 = vsel %vm389_vm0, %v386_v4, 0.0 }
  0x15   : > { %v392_v12 = vadd.f32 %v391_v9, %v390_v5  ;;  %v582_v13 = vsel %vm389_vm0, %v577_v7, 0.0  ;;  %v586_v19 = vsel %vm389_vm0, %v578_v11, 0.0 }
  0x16   : > { %v583_v16 = vadd.f32 %v582_v13, %v581_v8 }
  0x17   : > { %v394_v17 = vadd.f32 %v393_v10, %v392_v12 }
  0x18   : > { %v585_v18 = vadd.f32 %v584_v14, %v583_v16 }
  0x19   : > { %v396_v20 = vadd.f32 %v395_v15, %v394_v17 }
  0x1a   : > { %v587_v21 = vadd.f32 %v586_v19, %v585_v18 }
  0x1b   : > { %397 = vadd.xlane.f32.xlu0 %v396_v20 }
  0x1f   : > { %588 = vadd.xlane.f32.xlu0 %v587_v21 }
  0xa8   : > { %v398_v28 = vpop.xlane.xlu0 %397 }
  0xa9   : > { %v399_v29 = vmul.f32 0.001953125, %v398_v28 }
  0xab   : > { %v407_v30 = vrot.slane %v399_v29, %v406_v27  ;;  %558 = vst.msk [vmem:[%s356_s7] sm:$0xf] %vm557_vm1, %v399_v29 }
  0xac   : > { %v589_v31 = vpop.xlane.xlu0 %588 }
  0xad   : > { %v409_v32 = vsub.f32 %v381_v0, %v407_v30  ;;  %v410_v33 = vsub.f32 %v382_v1, %v407_v30  ;;  %v590_v34 = vmul.f32 0.001953125, %v589_v31 }
  0xaf   : > { %v598_v35 = vrot.slane %v590_v34, %v406_v27  ;;  %748 = vst.msk [vmem:[%s365_s10] sm:$0xf] %vm557_vm1, %v590_v34  ;;  %v413_v36 = vcombine.high %v409_v32, %v409_v32  ;;  %v414_v38 = vcombine.high %v410_v33, %v410_v33 }
  0xb1   : > { %v600_v37 = vsub.f32 %v573_v2, %v598_v35  ;;  %417 = vmatprep.subr.mxu0 %v413_v36  ;;  %481 = vmatprep.mubr.f32.mxu0 %v413_v36  ;;  %v601_v39 = vsub.f32 %v574_v6, %v598_v35 }
  0xb2   : > { %418 = vmatpush1.xpose.msra.mxu0 %v409_v32 }
  0xb3   : > { %487 = vmatprep.subr.mxu0 %v414_v38  ;;  %v604_v40 = vcombine.high %v600_v37, %v600_v37  ;;  %v605_v41 = vcombine.high %v601_v39, %v601_v39 }
  0xb5   : > { %482 = vmatmul.mubr.f32.vlgmr.msra.gmra.mrb[0].mxu0 %v409_v32  ;;  %608 = vmatprep.subr.mxu1 %v604_v40 }
  0xb6   : > { %672 = vmatprep.mubr.f32.mxu1 %v604_v40  ;;  %488 = vmatpush1.xpose.msra.mxu0 %v410_v33 }
  0xb7   : > { %551 = vmatprep.mubr.f32.mxu0 %v414_v38  ;;  %609 = vmatpush1.xpose.msra.mxu1 %v600_v37 }
  0xb8   : > { %678 = vmatprep.subr.mxu1 %v605_v41 }
  0xba   : > { %673 = vmatmul.mubr.f32.vlgmr.msra.gmra.mrb[0].mxu1 %v600_v37 }
  0xbb   : > { %679 = vmatpush1.xpose.msra.mxu1 %v601_v39  ;;  %742 = vmatprep.mubr.f32.mxu1 %v605_v41 }
  0xbd   : > { %552 = vmatmul.mubr.f32.vlgmr.msra.gmra.mrb[0].mxu0 %v410_v33 }
  0xc2   : > { %743 = vmatmul.mubr.f32.vlgmr.msra.gmra.mrb[0].mxu1 %v601_v39 }
 0x190   : > { %v553_v42 = vpop.f32.mrb[0].mxu0 }
 0x191   : > { %564 = vst.msk [vmem:[%s373_s13] sm:$0xf] %vm563_vm2, %v553_v42  ;;  %v555_v43 = vpop.f32.mrb[1].mxu0 }
 0x195   : > { %v744_v44 = vpop.f32.mrb[0].mxu1 }
 0x196   : > { %753 = vst.msk [vmem:[%s380_s16] sm:$0xf] %vm563_vm2, %v744_v44  ;;  %v746_v45 = vpop.f32.mrb[1].mxu1 }
 0x197 PF: > { %s16_s20 = sadd.s32 1, %s1061_s20   ;;  %s1163_s18 = smov %s1057_s19 }
 0x198   : > { %p13_p5 = scmp.ge.s32.totalorder %s16_s20, 4   ;;  %s1164_s19 = smov %s1166_s21 }
 0x19a   :  { %15 = sbr.rel (!%p13_p5) target bundleno = 2 (0x2), region = 113 }

// kernel: attention_block_pallas.5
= control target key start
LH: loop header
LB: loop body
LE: loop exit
PB: predicated region body
PF: predicated region fallthrough
CT: control target
= control target key end

     0   :  { %s515_s12 = smov 0   ;;  %s517_s13 = smov 0   ;;  %s559_s0 = inlined_call_operand.vmem [shape: f32[2,4,512], index: 0, kind: input, shape index: {}]   ;;  %s560_s1 = inlined_call_operand.vmem [shape: f32[2,1,512], index: 1, kind: input, shape index: {}]   ;;  %s561_s2 = inlined_call_operand.vmem [shape: f32[2,1,2], index: 2, kind: input, shape index: {}]   ;;  %s562_s3 = inlined_call_operand.vmem [shape: f32[2,4,512], index: 3, kind: output, shape index: {}]  }
   0x1   :  { %s519_s14 = smov 0  }
   0x2 LB: > { %s25_s15 = sadd.s32 1, %s487_s13  ;;  %p426_p0 = scmp.ge.s32.totalorder %s491_s14, 1  ;;  %s491_s14 = sphi %s519_s14, %s13_s14   ;;  %s487_s13 = sphi %s517_s13, %s564_s13   ;;  %s483_s12 = sphi %s515_s12, %s563_s12  }
   0x3   : > { %p27_p1 = scmp.ge.s32.totalorder %s25_s15, 2  ;;  %p182_p2 = scmp.lt.s32.totalorder %s491_s14, 3 }
   0x5   : > { %s566_s15 = smov (%p27_p1, %s25_s15), 0  ;;  %p183_p3 = pnand %p426_p0, %p182_p2 }
   0x6   : > { %p226_p4 = scmp.lt.s32.totalorder (!%p183_p3), %s483_s12, 1  ;;  %v493_v0 = vmov (!%p183_p3), 0   ;;  %v494_v2 = vmov (!%p183_p3), 1   ;;  %v264_v3 = vlaneseq (!%p183_p3) }
   0x7   : > { %186 = sbr.rel (%p183_p3) target bundleno = 187 (0xbb), region = 32  ;;  %463 = vset.pattern.permute.xlu0 (!%p183_p3), %v493_v0 }
   0x8   : > { %v265_v4 = vshrl.u32 (!%p183_p3), %v264_v3, 7 }
   0xa   : > { %v266_v5 = vsub.s32 (!%p183_p3), 0, %v265_v4  ;;  %v293_v16 = vsub.s32 (!%p183_p3), 1, %v265_v4  ;;  %v297_v17 = vsub.s32 (!%p183_p3), 2, %v265_v4  ;;  %v301_v18 = vsub.s32 (!%p183_p3), 3, %v265_v4 }
   0xe   : > { %s568_s12 = smov (!%p226_p4, %s483_s12), 1 }
   0xf   : > { %s246_s18 = scalar_lea.vmem %s561_s2, %s568_s12  ;;  %s429_s19 = sshll.u32 %s568_s12, 2 }
  0x10   : > { %v257_v1 = vld [vmem:[%s246_s18] sm:$0x1]  ;;  %s242_s22 = scalar_lea.vmem %s560_s1, %s429_s19  ;;  %s435_s23 = sshll.u32 %s568_s12, 4 }
  0x11   : > { %261 = vperm.xlu0 %463, %v257_v1   ;;  %v258_v8 = vld [vmem:[%s242_s22] sm:$0xf]  ;;  %s233_s26 = scalar_lea.vmem %s559_s0, %s435_s23  ;;  %s255_s29 = scalar_lea.vmem %s562_s3, %s435_s23 }
  0x12   : > { %v284_v24 = vld [vmem:[%s233_s26] sm:$0xff]  ;;  %v285_v25 = vld [vmem:[%s233_s26 + $0x8] sm:$0xff] }
  0x15   : > { %464 = vset.pattern.permute.xlu0 %v494_v2 }
  0x16   : > { %270 = vperm.xlu0 %464, %v257_v1  }
  0x90   : > { %v262_v6 = vpop.permute.xlu0 %261 }
  0x91   : > { %v267_v7 = vrot.slane %v262_v6, %v266_v5 }
  0x93   : > { %v268_v10 = vmul.f32 %v267_v7, %v258_v8 }
  0x95   : > { %v271_v9 = vpop.permute.xlu0 %270 }
  0x96   : > { %v276_v11 = vrot.slane %v271_v9, %v266_v5 }
  0x98   : > { %v277_v12 = vadd.f32 %v276_v11, %v268_v10 }
  0x9a   : > { %v432_v13 = vmul.f32 -1.442695, %v277_v12 }
  0x9c   : > { %465 = vpow2.f32 %v432_v13 }
  0xa6   : > { %v466_v14 = vpop.eup %465 }
  0xa7   : > { %v281_v15 = vadd.f32 1.0, %v466_v14 }
  0xa9   : > { %467 = vrcp.f32 %v281_v15 }
  0xb3   : > { %v468_v19 = vpop.eup %467 }
  0xb4   : > { %v290_v20 = vrot.slane %v468_v19, %v266_v5  ;;  %v294_v21 = vrot.slane %v468_v19, %v293_v16  ;;  %v298_v22 = vrot.slane %v468_v19, %v297_v17  ;;  %v302_v23 = vrot.slane %v468_v19, %v301_v18 }
  0xb6   : > { %v303_v26 = vcombine.low %v290_v20, %v294_v21  ;;  %v304_v27 = vcombine.low %v298_v22, %v302_v23 }
  0xb8   : > { %v307_v28 = vmul.f32 %v303_v26, %v284_v24  ;;  %v308_v29 = vmul.f32 %v304_v27, %v285_v25 }
  0xba   : > { %309 = vst [vmem:[%s255_s29] sm:$0xff] %v307_v28  ;;  %310 = vst [vmem:[%s255_s29 + $0x8] sm:$0xff] %v308_v29 }
  0xbb PF: > { %s13_s14 = sadd.s32 1, %s491_s14   ;;  %s563_s12 = smov %s487_s13 }
  0xbc   : > { %p10_p5 = scmp.ge.s32.totalorder %s13_s14, 4   ;;  %s564_s13 = smov %s566_s15 }
  0xbe   :  { %12 = sbr.rel (!%p10_p5) target bundleno = 2 (0x2), region = 68 }

// kernel: attention_block_pallas.4
= control target key start
LH: loop header
LB: loop body
LE: loop exit
PB: predicated region body
PF: predicated region fallthrough
CT: control target
= control target key end

     0   :  { %s1635_s30 = smov 0   ;;  %s1637_s10 = smov 0   ;;  %s1804_s0 = inlined_call_operand.vmem [shape: f32[2,4,512], index: 0, kind: input, shape index: {}]   ;;  %s1805_s1 = inlined_call_operand.vmem [shape: f32[2,4,512], index: 1, kind: input, shape index: {}]   ;;  %s1806_s2 = inlined_call_operand.vmem [shape: f32[2,32,4], index: 2, kind: input, shape index: {}]   ;;  %s1807_s3 = inlined_call_operand.vmem [shape: f32[2,32,4], index: 3, kind: input, shape index: {}]   ;;  %s1808_s4 = inlined_call_operand.vmem [shape: f32[2,32,1], index: 4, kind: input, shape index: {}]   ;;  %s1809_s5 = inlined_call_operand.vmem [shape: f32[1,32], index: 5, kind: input, shape index: {}]   ;;  %s1810_s6 = inlined_call_operand.vmem [shape: f32[1,2], index: 6, kind: input, shape index: {}]   ;;  %s1811_s7 = inlined_call_operand.vmem [shape: f32[2,1,512], index: 7, kind: output, shape index: {0}]   ;;  %s1812_s8 = inlined_call_operand.vmem [shape: f32[2,1,1,1], index: 8, kind: output, shape index: {1}]   ;;  %s1813_s9 = inlined_call_operand.vmem [shape: f32[2,1,1,1], index: 9, kind: output, shape index: {2}]  }
   0x1   :  { %s1639_s11 = smov 0  }
   0x2 LB: > { %s32_s12 = sadd.s32 1, %s1575_s10  ;;  %p1444_p0 = scmp.ge.s32.totalorder %s1579_s11, 1  ;;  %s1579_s11 = sphi %s1639_s11, %s20_s11   ;;  %s1575_s10 = sphi %s1637_s10, %s1815_s10   ;;  %s1571_s30 = sphi %s1635_s30, %s1814_s30  }
   0x3   : > { %p34_p1 = scmp.ge.s32.totalorder %s32_s12, 2  ;;  %p364_p2 = scmp.lt.s32.totalorder %s1579_s11, 3 }
   0x5   : > { %s1817_s12 = smov (%p34_p1, %s32_s12), 0  ;;  %p365_p3 = pnand %p1444_p0, %p364_p2 }
   0x6   : > { %p444_p4 = scmp.lt.s32.totalorder (!%p365_p3), %s1571_s30, 1  ;;  %v1581_v0 = vmov (!%p365_p3), 0.0   ;;  %v975_v1 = vlaneseq (!%p365_p3)  ;;  %v1582_v2 = vmov (!%p365_p3), 0   ;;  %v1667_v4 = vld [vmem:[%s1810_s6] sm:$0x1] (!%p365_p3)  ;;  %vm528_vm0 = vcmask (!%p365_p3), 1043456  }
   0x7   : > { %368 = sbr.rel (%p365_p3) target bundleno = 795 (0x31b), region = 48  ;;  %601 = vmatprep.mubr.f32.mxu0 (!%p365_p3), %v1581_v0  ;;  %690 = vmatprep.mubr.f32.mxu1 (!%p365_p3), %v1581_v0  ;;  %vm515_vm1 = vcmask (!%p365_p3), 31744   ;;  %v1583_v27 = vmov (!%p365_p3), 1  }
   0x8   : > { %1549 = vset.pattern.permute.xlu0 (!%p365_p3), %v1582_v2  ;;  %1550 = vset.pattern.permute.xlu1 (!%p365_p3), %v1582_v2  ;;  %v1658_v3 = vshrl.u32 (!%p365_p3), %v975_v1, 7 }
   0xa   : > { %v977_v5 = vsub.s32 (!%p365_p3), 0, %v1658_v3 }
   0xc   : > { %v978_v11 = vrot.slane (!%p365_p3), %v1667_v4, %v977_v5 }
   0xe   : > { %s1819_s30 = smov (!%p444_p4, %s1571_s30), 1  ;;  %980 = vperm.xlu1 %1550, %v978_v11  }
   0xf   : > { %s1484_s13 = sshll.u32 %s1819_s30, 4  ;;  %s1662_s14 = sshll.u32 %s1819_s30, 5 }
  0x10   : > { %s451_s19 = scalar_lea.vmem %s1804_s0, %s1484_s13  ;;  %s461_s22 = scalar_lea.vmem %s1805_s1, %s1484_s13 }
  0x11   : > { %v503_v6 = vld [vmem:[%s451_s19] sm:$0xff]  ;;  %s1680_s25 = scalar_lea.vmem %s1807_s3, %s1662_s14  ;;  %v504_v8 = vld [vmem:[%s451_s19 + $0x8] sm:$0xff]  ;;  %s477_s28 = scalar_lea.vmem %s1808_s4, %s1662_s14 }
  0x12   : > { %v509_v7 = vld [vmem:[%s461_s22] sm:$0xff]  ;;  %v510_v10 = vld [vmem:[%s461_s22 + $0x8] sm:$0xff]  ;;  %v717_v14 = vcombine.high %v503_v6, %v503_v6  ;;  %v718_v15 = vcombine.high %v504_v8, %v504_v8  ;;  %v919_v18 = vld [vmem:[%s477_s28 + $0x10] sm:$0xff]  ;;  %s467_s15 = scalar_lea.vmem %s1806_s2, %s1662_s14  ;;  %s1455_s17 = sshll.u32 %s1819_s30, 2 }
  0x13   : > { %v513_v9 = vcombine.high %v509_v7, %v509_v7  ;;  %v514_v12 = vcombine.high %v510_v10, %v510_v10  ;;  %v505_v13 = vld [vmem:[%s1680_s25] sm:$0xff]  ;;  %v506_v16 = vld [vmem:[%s1680_s25 + $0x8] sm:$0xff]  ;;  %v507_v19 = vld [vmem:[%s1680_s25 + $0x10] sm:$0xff]  ;;  %933 = vperm.xlu1 %1550, %v919_v18   ;;  %s485_s20 = scalar_lea.vmem %s1811_s7, %s1455_s17  ;;  %s492_s23 = scalar_lea.vmem %s1812_s8, %s1819_s30 }
  0x14   : > { %v917_v17 = vld [vmem:[%s477_s28] sm:$0xff]  ;;  %v918_v20 = vld [vmem:[%s477_s28 + $0x8] sm:$0xff]  ;;  %v508_v21 = vld [vmem:[%s1680_s25 + $0x18] sm:$0xff]  ;;  %s498_s26 = scalar_lea.vmem %s1813_s9, %s1819_s30 }
  0x15   : > { %1456 = vmatprep.subr.msk.mxu0 %vm528_vm0, %v513_v9  ;;  %1462 = vmatprep.subr.msk.mxu1 %vm528_vm0, %v514_v12  ;;  %v920_v22 = vld [vmem:[%s477_s28 + $0x18] sm:$0xff]  ;;  %v499_v23 = vld [vmem:[%s467_s15] sm:$0xff]  ;;  %v500_v24 = vld [vmem:[%s467_s15 + $0x8] sm:$0xff] }
  0x16   : > { %1457 = vmatpush1.msk.msra.mxu0 %vm528_vm0, %v509_v7  ;;  %1463 = vmatpush1.msk.msra.mxu1 %vm528_vm0, %v510_v10  ;;  %v501_v25 = vld [vmem:[%s467_s15 + $0x10] sm:$0xff]  ;;  %v502_v26 = vld [vmem:[%s467_s15 + $0x18] sm:$0xff] }
  0x17   : > { %1458 = vmatmul.mubr.msk.f32.vlgmr.msra.gmra.mrb[0].mxu0 %vm515_vm1, %v505_v13  ;;  %1464 = vmatmul.mubr.msk.f32.vlgmr.msra.gmra.mrb[0].mxu1 %vm515_vm1, %v505_v13 }
  0x18   : > { %607 = vmatprep.mubr.f32.mxu0 %v1581_v0  ;;  %696 = vmatprep.mubr.f32.mxu1 %v1581_v0 }
  0x19   : > { %1468 = vmatprep.subr.msk.mxu0 %vm528_vm0, %v717_v14  ;;  %1474 = vmatprep.subr.msk.mxu1 %vm528_vm0, %v718_v15 }
  0x1a   : > { %1469 = vmatpush1.msk.msra.mxu0 %vm528_vm0, %v503_v6  ;;  %1475 = vmatpush1.msk.msra.mxu1 %vm528_vm0, %v504_v8 }
  0x1b   : > { %1459 = vmatmul.mubr.msk.f32.gmra.mrb[2].mxu0 %vm515_vm1, %v506_v16  ;;  %1465 = vmatmul.mubr.msk.f32.gmra.mrb[2].mxu1 %vm515_vm1, %v506_v16 }
  0x1c   : > { %613 = vmatprep.mubr.f32.mxu0 %v1581_v0  ;;  %702 = vmatprep.mubr.f32.mxu1 %v1581_v0 }
  0x1d   : > { %923 = vperm.xlu0 %1549, %v917_v17   ;;  %1551 = vset.pattern.permute.xlu1 %v1583_v27 }
  0x1e   : > { %1017 = vperm.xlu1 %1551, %v1667_v4  }
  0x1f   : > { %1460 = vmatmul.mubr.msk.f32.gmra.mrb[4].mxu0 %vm515_vm1, %v507_v19  ;;  %1466 = vmatmul.mubr.msk.f32.gmra.mrb[4].mxu1 %vm515_vm1, %v507_v19 }
  0x20   : > { %619 = vmatprep.mubr.f32.mxu0 %v1581_v0  ;;  %708 = vmatprep.mubr.f32.mxu1 %v1581_v0 }
  0x21   : > { %928 = vperm.xlu0 %1549, %v918_v20  }
  0x23   : > { %1461 = vmatmul.mubr.msk.f32.gmra.mrb[6].mxu0 %vm515_vm1, %v508_v21  ;;  %1467 = vmatmul.mubr.msk.f32.gmra.mrb[6].mxu1 %vm515_vm1, %v508_v21 }
  0x24   : > { %803 = vmatprep.mubr.f32.mxu0 %v1581_v0  ;;  %892 = vmatprep.mubr.f32.mxu1 %v1581_v0 }
  0x25   : > { %938 = vperm.xlu0 %1549, %v920_v22  }
  0x27   : > { %1470 = vmatmul.mubr.msk.f32.vlgmr.msra.gmra.mrb[0].mxu0 %vm515_vm1, %v499_v23  ;;  %1476 = vmatmul.mubr.msk.f32.vlgmr.msra.gmra.mrb[0].mxu1 %vm515_vm1, %v499_v23 }
  0x28   : > { %809 = vmatprep.mubr.f32.mxu0 %v1581_v0  ;;  %898 = vmatprep.mubr.f32.mxu1 %v1581_v0 }
  0x29   : > { %1552 = vset.pattern.permute.xlu0 %v1583_v27 }
  0x2b   : > { %1471 = vmatmul.mubr.msk.f32.gmra.mrb[2].mxu0 %vm515_vm1, %v500_v24  ;;  %1477 = vmatmul.mubr.msk.f32.gmra.mrb[2].mxu1 %vm515_vm1, %v500_v24 }
  0x2c   : > { %815 = vmatprep.mubr.f32.mxu0 %v1581_v0  ;;  %904 = vmatprep.mubr.f32.mxu1 %v1581_v0 }
  0x2f   : > { %1472 = vmatmul.mubr.msk.f32.gmra.mrb[4].mxu0 %vm515_vm1, %v501_v25  ;;  %1478 = vmatmul.mubr.msk.f32.gmra.mrb[4].mxu1 %vm515_vm1, %v501_v25 }
  0x30   : > { %821 = vmatprep.mubr.f32.mxu0 %v1581_v0  ;;  %910 = vmatprep.mubr.f32.mxu1 %v1581_v0 }
  0x33   : > { %1473 = vmatmul.mubr.msk.f32.gmra.mrb[6].mxu0 %vm515_vm1, %v502_v26  ;;  %1479 = vmatmul.mubr.msk.f32.gmra.mrb[6].mxu1 %vm515_vm1, %v502_v26 }
  0x34   : > { %1092 = vmatprep.mubr.f32.mxu0 %v1581_v0  ;;  %1163 = vmatprep.mubr.f32.mxu1 %v1581_v0 }
  0x8d   : > { %v1738_v30 = vpop.permute.xlu1 %980 }
  0x92   : > { %v934_v52 = vpop.permute.xlu1 %933 }
  0x9c   : > { %v924_v28 = vpop.permute.xlu0 %923 }
  0xa0   : > { %v929_v39 = vpop.permute.xlu0 %928 }
  0xa4   : > { %v939_v12 = vpop.permute.xlu0 %938 }
  0xfa   : > { %v805_v29 = vpop.f32.mrb[0].mxu0  ;;  %v894_v32 = vpop.f32.mrb[0].mxu1 }
  0xfb   : > { %v941_v31 = vadd.f32 %v924_v28, %v805_v29  ;;  %v807_v33 = vpop.f32.mrb[1].mxu0  ;;  %v943_v34 = vadd.f32 %v924_v28, %v894_v32  ;;  %v896_v36 = vpop.f32.mrb[1].mxu1 }
  0xfc   : > { %v942_v35 = vadd.f32 %v924_v28, %v807_v33  ;;  %v944_v37 = vadd.f32 %v924_v28, %v896_v36 }
  0xfd   : > { %vm958_vm2 = vcmp.ge.f32.partialorder %v941_v31, 0.0  ;;  %v983_v38 = vmul.f32 %v1738_v30, %v941_v31  ;;  %vm960_vm3 = vcmp.ge.f32.partialorder %v943_v34, 0.0  ;;  %v985_v41 = vmul.f32 %v1738_v30, %v943_v34 }
  0xfe   : > { %vm959_vm4 = vcmp.ge.f32.partialorder %v942_v35, 0.0  ;;  %v811_v40 = vpop.f32.mrb[2].mxu0  ;;  %v984_v42 = vmul.f32 %v1738_v30, %v942_v35  ;;  %vm961_vm5 = vcmp.ge.f32.partialorder %v944_v37, 0.0  ;;  %v900_v45 = vpop.f32.mrb[2].mxu1  ;;  %v986_v47 = vmul.f32 %v1738_v30, %v944_v37 }
  0xff   : > { %v945_v43 = vadd.f32 %v929_v39, %v811_v40  ;;  %v1743_v44 = vsel %vm958_vm2, %v941_v31, %v983_v38  ;;  %v813_v46 = vpop.f32.mrb[3].mxu0  ;;  %v947_v48 = vadd.f32 %v929_v39, %v900_v45  ;;  %v1746_v49 = vsel %vm960_vm3, %v943_v34, %v985_v41  ;;  %v902_v51 = vpop.f32.mrb[3].mxu1 }
 0x100   : > { %v946_v50 = vadd.f32 %v929_v39, %v813_v46  ;;  %v1000_v53 = vsel %vm959_vm4, %v942_v35, %v984_v42  ;;  %v948_v55 = vadd.f32 %v929_v39, %v902_v51  ;;  %v1002_v56 = vsel %vm961_vm5, %v944_v37, %v986_v47  ;;  %v1018_v47 = vpop.permute.xlu1 %1017 }
 0x101   : > { %vm962_vm6 = vcmp.ge.f32.partialorder %v945_v43, 0.0  ;;  %v987_v54 = vmul.f32 %v1738_v30, %v945_v43  ;;  %vm964_vm7 = vcmp.ge.f32.partialorder %v947_v48, 0.0  ;;  %v989_v57 = vmul.f32 %v1738_v30, %v947_v48 }
 0x102   : > { %vm963_vm8 = vcmp.ge.f32.partialorder %v946_v50, 0.0  ;;  %v988_v58 = vmul.f32 %v1738_v30, %v946_v50  ;;  %v817_v59 = vpop.f32.mrb[4].mxu0  ;;  %vm965_vm9 = vcmp.ge.f32.partialorder %v948_v55, 0.0  ;;  %v990_v61 = vmul.f32 %v1738_v30, %v948_v55  ;;  %v906_v63 = vpop.f32.mrb[4].mxu1 }
 0x103   : > { %v1003_v60 = vsel %vm962_vm6, %v945_v43, %v987_v54  ;;  %v949_v62 = vadd.f32 %v934_v52, %v817_v59  ;;  %v819_v0 = vpop.f32.mrb[5].mxu0  ;;  %v1005_v4 = vsel %vm964_vm7, %v947_v48, %v989_v57  ;;  %v951_v6 = vadd.f32 %v934_v52, %v906_v63  ;;  %v908_v8 = vpop.f32.mrb[5].mxu1 }
 0x104   : > { %v1491_v2 = vpack.c.bf16 %v1003_v60, %v1743_v44  ;;  %v950_v7 = vadd.f32 %v934_v52, %v819_v0  ;;  %v1499_v9 = vpack.c.bf16 %v1005_v4, %v1746_v49  ;;  %v952_v11 = vadd.f32 %v934_v52, %v908_v8 }
 0x105   : > { %vm966_vm10 = vcmp.ge.f32.partialorder %v949_v62, 0.0  ;;  %v991_v10 = vmul.f32 %v1738_v30, %v949_v62  ;;  %vm968_vm11 = vcmp.ge.f32.partialorder %v951_v6, 0.0  ;;  %v993_v13 = vmul.f32 %v1738_v30, %v951_v6 }
 0x106   : > { %vm967_vm12 = vcmp.ge.f32.partialorder %v950_v7, 0.0  ;;  %v992_v14 = vmul.f32 %v1738_v30, %v950_v7  ;;  %v823_v15 = vpop.f32.mrb[6].mxu0  ;;  %vm969_vm13 = vcmp.ge.f32.partialorder %v952_v11, 0.0  ;;  %v994_v17 = vmul.f32 %v1738_v30, %v952_v11  ;;  %v912_v19 = vpop.f32.mrb[6].mxu1 }
 0x107   : > { %v1007_v16 = vsel %vm966_vm10, %v949_v62, %v991_v10  ;;  %v953_v18 = vadd.f32 %v939_v12, %v823_v15  ;;  %v825_v20 = vpop.f32.mrb[7].mxu0  ;;  %v1009_v21 = vsel %vm968_vm11, %v951_v6, %v993_v13  ;;  %v955_v22 = vadd.f32 %v939_v12, %v912_v19  ;;  %v914_v24 = vpop.f32.mrb[7].mxu1 }
 0x108   : > { %v954_v23 = vadd.f32 %v939_v12, %v825_v20  ;;  %v1004_v25 = vsel %vm963_vm8, %v946_v50, %v988_v58  ;;  %v956_v27 = vadd.f32 %v939_v12, %v914_v24  ;;  %v1006_v34 = vsel %vm965_vm9, %v948_v55, %v990_v61 }
 0x109   : > { %vm970_vm14 = vcmp.ge.f32.partialorder %v953_v18, 0.0  ;;  %v995_v26 = vmul.f32 %v1738_v30, %v953_v18  ;;  %v1489_v28 = vpack.c.bf16 %v1004_v25, %v1000_v53  ;;  %vm972_vm15 = vcmp.ge.f32.partialorder %v955_v22, 0.0 }
 0x10a   : > { %v997_v29 = vmul.f32 %v1738_v30, %v955_v22  ;;  %vm971_vm0 = vcmp.ge.f32.partialorder %v954_v23, 0.0  ;;  %v996_v31 = vmul.f32 %v1738_v30, %v954_v23  ;;  %vm973_vm1 = vcmp.ge.f32.partialorder %v956_v27, 0.0 }
 0x10b   : > { %v1011_v32 = vsel %vm970_vm14, %v953_v18, %v995_v26  ;;  %v998_v33 = vmul.f32 %v1738_v30, %v956_v27  ;;  %1490 = vmatprep.subr.bf16.mxu0 %v1489_v28  ;;  %v1497_v37 = vpack.c.bf16 %v1006_v34, %v1002_v56  ;;  %v1008_v38 = vsel %vm967_vm12, %v950_v7, %v992_v14  ;;  %v1015_v30 = vld [vmem:[%s1809_s5] sm:$0x1] }
 0x10c   : > { %v1495_v35 = vpack.c.bf16 %v1011_v32, %v1007_v16  ;;  %v1013_v36 = vsel %vm972_vm15, %v955_v22, %v997_v29  ;;  %1492 = vmatpush1.bf16.msra.mxu0 %v1491_v2  ;;  %v1012_v40 = vsel %vm971_vm0, %v954_v23, %v996_v31  ;;  %v1010_v41 = vsel %vm969_vm13, %v952_v11, %v994_v17 }
 0x10d   : > { %v1503_v39 = vpack.c.bf16 %v1013_v36, %v1009_v21  ;;  %v1014_v42 = vsel %vm973_vm1, %v956_v27, %v998_v33  ;;  %1498 = vmatprep.subr.bf16.mxu1 %v1497_v37  ;;  %v1493_v43 = vpack.c.bf16 %v1012_v40, %v1008_v38  ;;  %vm1024_vm2 = vcmask 261120  }
 0x10e   : > { %v1501_v44 = vpack.c.bf16 %v1014_v42, %v1010_v41  ;;  %1500 = vmatpush1.bf16.msra.mxu1 %v1499_v9  ;;  %v1584_v45 = vmov 1966171168   ;;  %v1023_v48 = vrot.slane %v1018_v47, %v977_v5  ;;  %vm1204_vm3 = vcmask 1040384  }
 0x10f   : > { %1494 = vmatprep.subr.bf16.mxu0 %v1493_v43  ;;  %v1177_v46 = vunpack.c.l.s4 %v1584_v45  ;;  %vm1201_vm4 = vcmp.lt.s32.totalorder %v975_v1, 512  ;;  %vm1219_vm5 = vcmask 0  }
 0x110   : > { %1502 = vmatprep.subr.bf16.mxu1 %v1501_v44  ;;  %1496 = vmatpush1.bf16.msra.mxu0 %v1495_v35 }
 0x111   : > { %v1178_v49 = vunpack.c.0.s8 %v1177_v46 }
 0x112   : > { %1504 = vmatpush1.bf16.msra.mxu1 %v1503_v39 }
 0x113   : > { %1480 = vmatmul.mubr.msk.f32.vlgmr.msra.gmra.mrb[8].mxu0 %vm1024_vm2, %v1015_v30  ;;  %v1181_v53 = vsub.s32 %v1178_v49, %v1658_v3 }
 0x115   : > { %1481 = vmatmul.mubr.msk.f32.vlgmr.msra.gmra.mrb[8].mxu1 %vm1024_vm2, %v1015_v30 }
 0x1e6   : > { %v1094_v50 = vpop.f32.mrb[8].mxu0 }
 0x1e7   : > { %v1095_v51 = vadd.f32 %v1094_v50, %v1023_v48  ;;  %v1096_v52 = vpop.f32.mrb[9].mxu0 }
 0x1e8   : > { %v1097_v54 = vadd.f32 %v1096_v52, %v1023_v48  ;;  %v1165_v55 = vpop.f32.mrb[8].mxu1 }
 0x1e9   : > { %v1205_v56 = vsel %vm1204_vm3, %v1095_v51, 0.0  ;;  %v1166_v57 = vadd.f32 %v1165_v55, %v1023_v48  ;;  %v1167_v58 = vpop.f32.mrb[9].mxu1 }
 0x1ea   : > { %v1174_v59 = vcombine.low %v1095_v51, %v1097_v54  ;;  %v1206_v60 = vsel %vm1204_vm3, %v1097_v54, 0.0  ;;  %v1168_v61 = vadd.f32 %v1167_v58, %v1023_v48 }
 0x1eb   : > { %v1207_v62 = vadd.f32 %v1206_v60, %v1205_v56  ;;  %v1208_v0 = vsel %vm1204_vm3, %v1166_v57, 0.0 }
 0x1ec   : > { %v1182_v5 = vrot.slane %v1174_v59, %v1181_v53  ;;  %v1175_v63 = vcombine.low %v1166_v57, %v1168_v61  ;;  %v1210_v3 = vsel %vm1204_vm3, %v1168_v61, 0.0 }
 0x1ed   : > { %v1209_v2 = vadd.f32 %v1208_v0, %v1207_v62 }
 0x1ee   : > { %v1189_v4 = vrot.slane %v1175_v63, %v1181_v53 }
 0x1ef   : > { %v1211_v6 = vadd.f32 %v1210_v3, %v1209_v2 }
 0x1f0   : > { %v1190_v7 = vcombine.low %v1182_v5, %v1189_v4 }
 0x1f1   : > { %1212 = vadd.xlane.f32.xlu0 %v1211_v6 }
 0x1f2   : > { %v1197_v8 = vrot.slane %v1190_v7, %v1181_v53 }
 0x1f4   : > { %1203 = vst.msk [vmem:[%s485_s20] sm:$0xf] %vm1201_vm4, %v1197_v8 }
 0x27e   : > { %v1213_v9 = vpop.xlane.xlu0 %1212 }
 0x27f   : > { %v1214_v10 = vmul.f32 0.001953125, %v1213_v9 }
 0x281   : > { %v1215_v11 = vsub.f32 %v1095_v51, %v1214_v10  ;;  %v1216_v12 = vsub.f32 %v1097_v54, %v1214_v10  ;;  %v1217_v13 = vsub.f32 %v1166_v57, %v1214_v10  ;;  %v1218_v14 = vsub.f32 %v1168_v61, %v1214_v10  ;;  %1220 = vst.msk [vmem:[%s492_s23] sm:$0x1] %vm1219_vm5, %v1214_v10 }
 0x283   : > { %v1221_v1 = vmul.f32 %v1215_v11, %v1215_v11  ;;  %v1222_v15 = vmul.f32 %v1216_v12, %v1216_v12  ;;  %v1223_v16 = vmul.f32 %v1217_v13, %v1217_v13  ;;  %v1224_v17 = vmul.f32 %v1218_v14, %v1218_v14 }
 0x285   : > { %v1225_v18 = vsel %vm1204_vm3, %v1221_v1, 0.0  ;;  %v1226_v19 = vsel %vm1204_vm3, %v1222_v15, 0.0  ;;  %v1228_v21 = vsel %vm1204_vm3, %v1223_v16, 0.0  ;;  %v1230_v23 = vsel %vm1204_vm3, %v1224_v17, 0.0 }
 0x286   : > { %v1227_v20 = vadd.f32 %v1226_v19, %v1225_v18 }
 0x288   : > { %v1229_v22 = vadd.f32 %v1228_v21, %v1227_v20 }
 0x28a   : > { %v1231_v24 = vadd.f32 %v1230_v23, %v1229_v22 }
 0x28c   : > { %1232 = vadd.xlane.f32.xlu1 %v1231_v24 }
 0x319   : > { %v1233_v25 = vpop.xlane.xlu1 %1232 }
 0x31a   : > { %1234 = vst.msk [vmem:[%s498_s26] sm:$0x1] %vm1219_vm5, %v1233_v25 }
 0x31b PF: > { %s20_s11 = sadd.s32 1, %s1579_s11   ;;  %s1814_s30 = smov %s1575_s10 }
 0x31c   : > { %p17_p5 = scmp.ge.s32.totalorder %s20_s11, 4   ;;  %s1815_s10 = smov %s1817_s12 }
 0x31e   :  { %19 = sbr.rel (!%p17_p5) target bundleno = 2 (0x2), region = 114 }

</bundles_post_ra>
